<compile_context>
chip_gen: v7x
topology: tpu7x:2x2x1
jax: 0.10.0
libtpu: 0.0.40
codegen_flags: <defaults>
</compile_context>

<pallas_src>
import functools

import jax
import jax.numpy as jnp
from jax.experimental import pallas as pl
from jax.experimental.pallas import tpu as pltpu


# ---------------------------------------------------------------------------
# Kernel bodies
# ---------------------------------------------------------------------------

def _kl_rows_from_logits(s_raw, t_raw, inv_T):
    """Per-row KL(p_t || p_s) for a (tb, C) tile of logits, f32 math.

    Restructured so no full-tile log_p_s / p_t temporaries are materialized:
      KL_row = (1/t_sum) * sum_j t_exp_j * (t_j - s_j)
               + (s_max + s_lse) - (t_max + log(t_sum))
    (exact: the per-row constants fold out of the sum because sum_j p_t_j = 1).
    """
    s = s_raw.astype(jnp.float32) * inv_T
    t = t_raw.astype(jnp.float32) * inv_T

    s_max = jnp.max(s, axis=-1, keepdims=True)
    s_lse = jnp.log(jnp.sum(jnp.exp(s - s_max), axis=-1, keepdims=True))

    t_max = jnp.max(t, axis=-1, keepdims=True)
    t_exp = jnp.exp(t - t_max)
    t_sum = jnp.sum(t_exp, axis=-1, keepdims=True)

    dot = jnp.sum(t_exp * (t - s), axis=-1, keepdims=True)

    # (tb, 1)-only reciprocal -> negligible cost; exact keeps tolerances tight.
    inv_t_sum = pl.reciprocal(t_sum, approx=False)
    return inv_t_sum * dot + (s_max + s_lse) - (t_max + jnp.log(t_sum))


def _distill_kl_rows_kernel(ys_ref, yt_ref, kl_ref, *, inv_T):
    """is_ca=True path: per-row KL, (tb, 1) output block."""
    kl_ref[...] = _kl_rows_from_logits(ys_ref[...], yt_ref[...], inv_T)


def _distill_kl_blocksum_kernel(ys_ref, yt_ref, psum_ref, *, inv_T, n_rows):
    """batchmean path: one masked per-block partial sum, lane-dense store."""
    tb = ys_ref.shape[0]
    kl = _kl_rows_from_logits(ys_ref[...], yt_ref[...], inv_T)        # (tb, 1)
    # Mask rows past the true batch size (ragged last block reads garbage).
    row = pl.program_id(0) * tb + jax.lax.broadcasted_iota(
        jnp.int32, (tb, 1), 0)
    kl = jnp.where(row < n_rows, kl, 0.0)
    psum_ref[...] = jnp.broadcast_to(jnp.sum(kl), psum_ref.shape)


# ---------------------------------------------------------------------------
# Tiling / VMEM budgeting
# ---------------------------------------------------------------------------

def _vmem_capacity_bytes():
    try:
        cap = getattr(pltpu.get_tpu_info(), "vmem_capacity_bytes", None)
        if cap:
            return int(cap)
    except Exception:
        pass
    return 64 * 1024 * 1024          # conservative (v7x per-TensorCore)


def _choose_tb(B, C, itemsize, input_buffers):
    """Batch-tile size derived from the real VMEM working set.

    Per row of a tile the live bytes are roughly:
      inputs : 2 arrays x input_buffers pipeline buffers x C x itemsize
      temps  : ~5 live (tb, C) f32 intermediates in the kernel body
               (s, t, exp(s-s_max), t_exp, t_exp*(t-s))
    Target ~40% of this generation's VMEM so v5e/v6e (128 MiB) pick large
    blocks while v7x (64 MiB) stays out of spill.
    """
    row_align = 8 if itemsize >= 4 else 16          # f32 vs bf16 sublane pack
    budget = int(_vmem_capacity_bytes() * 0.40)
    per_row = 2 * input_buffers * C * itemsize + 5 * C * 4
    tb = budget // max(per_row, 1)
    tb = max(row_align, (tb // row_align) * row_align)
    if B >= 2 * row_align:
        # Keep >= 2 grid steps: DMA/compute overlap + both v7x TensorCores.
        tb = min(tb, max(row_align, (B // 2 // row_align) * row_align))
    if tb >= B:
        tb = B      # whole batch in one block (block == full array dim is ok)
    return tb


# ---------------------------------------------------------------------------
# Public wrapper (matches DistillKL.forward semantics)
# ---------------------------------------------------------------------------

def distill_kl(y_s, y_t, T, is_ca=False, *, input_buffers=2):
    """Pallas implementation of DistillKL.forward.

    y_s, y_t : (B, C) logits.  Keeping them bf16 in HBM is the recommended
               default (halves HBM traffic; the kernel upcasts to f32).
    T        : static Python number (temperature).
    Returns a scalar (batchmean KL * T**2) if is_ca=False, otherwise a (B,)
    per-sample KL * T**2.
    input_buffers: pipeline depth for the two input streams (sweep 3 on v7x).
    """
    assert y_s.shape == y_t.shape and y_s.ndim == 2
    B, C = y_s.shape
    itemsize = jnp.dtype(y_s.dtype).itemsize
    tb = _choose_tb(B, C, itemsize, input_buffers)
    n_blocks = pl.cdiv(B, tb)
    inv_T = 1.0 / float(T)
    T2 = float(T) ** 2

    compiler_params = pltpu.CompilerParams(
        dimension_semantics=("parallel",),                  # rows independent
        vmem_limit_bytes=int(_vmem_capacity_bytes() * 0.75),
    )

    def _in_spec():
        kwargs = {}
        if input_buffers != 2:        # 2 is the default pipeline depth
            kwargs["pipeline_mode"] = pl.Buffered(input_buffers)
        return pl.BlockSpec((tb, C), lambda i: (i, 0), **kwargs)

    if is_ca:
        # Per-row KL.  Output is padded to a whole number of blocks (tiny
        # (Bp, 1) f32 array); the inputs themselves are NOT padded/copied.
        Bp = n_blocks * tb
        kl_rows = pl.pallas_call(
            functools.partial(_distill_kl_rows_kernel, inv_T=inv_T),
            out_shape=jax.ShapeDtypeStruct((Bp, 1), jnp.float32),
            grid=(n_blocks,),
            in_specs=[_in_spec(), _in_spec()],
            out_specs=pl.BlockSpec((tb, 1), lambda i: (i, 0)),
            compiler_params=compiler_params,
        )(y_s, y_t)
        return kl_rows[:B, 0] * T2

    # batchmean: one lane-dense (8, 128) partial-sum slab per grid step.
    psum = pl.pallas_call(
        functools.partial(_distill_kl_blocksum_kernel, inv_T=inv_T, n_rows=B),
        out_shape=jax.ShapeDtypeStruct((n_blocks, 8, 128), jnp.float32),
        grid=(n_blocks,),
        in_specs=[_in_spec(), _in_spec()],
        out_specs=pl.BlockSpec((1, 8, 128), lambda i: (i, 0, 0)),
        compiler_params=compiler_params,
    )(y_s, y_t)
    return (jnp.sum(psum[:, 0, 0]) / B) * T2


# ---------------------------------------------------------------------------
# Pure-JAX reference (matches the PyTorch module), f32 math
# ---------------------------------------------------------------------------

def _distill_kl_ref(y_s, y_t, T, is_ca=False):
    y_s = y_s.astype(jnp.float32)
    y_t = y_t.astype(jnp.float32)
    log_p_s = jax.nn.log_softmax(y_s / T, axis=1)
    p_t = jax.nn.softmax(y_t / T, axis=1)
    log_p_t = jax.nn.log_softmax(y_t / T, axis=1)
    kl = p_t * (log_p_t - log_p_s)
    if is_ca:
        return jnp.sum(kl, axis=-1) * T ** 2
    return (jnp.sum(kl) / y_s.shape[0]) * T ** 2


if __name__ == "__main__":
    T = 4.0
    key = jax.random.PRNGKey(0)

    def check(B, C, dtype, rtol, atol):
        k1, k2 = jax.random.split(jax.random.fold_in(key, B * 1000 + C))
        y_s = jax.random.normal(k1, (B, C), dtype=jnp.float32).astype(dtype)
        y_t = jax.random.normal(k2, (B, C), dtype=jnp.float32).astype(dtype)

        # batchmean branch (default forward)
        out = jax.block_until_ready(distill_kl(y_s, y_t, T, is_ca=False))
        ref = _distill_kl_ref(y_s, y_t, T, is_ca=False)
        assert jnp.allclose(out, ref, rtol=rtol, atol=atol), (B, C, dtype, out, ref)

        # is_ca branch (per-sample KL)
        out_ca = jax.block_until_ready(distill_kl(y_s, y_t, T, is_ca=True))
        ref_ca = _distill_kl_ref(y_s, y_t, T, is_ca=True)
        assert jnp.allclose(out_ca, ref_ca, rtol=rtol, atol=atol), (B, C, dtype)

    # Whole batch in one block.
    check(8, 32, jnp.float32, 1e-4, 1e-5)
    # Ragged batch: 3 grid steps with a partial last block (masking / slicing
    # path exercised, no jnp.pad of the inputs).
    check(20, 48, jnp.float32, 1e-4, 1e-5)
    # bf16 logits in HBM (recommended caller dtype) — kernel upcasts to f32.
    check(48, 64, jnp.bfloat16, 1e-4, 1e-4)

    print("KERNEL_OK")
</pallas_src>

<mosaic_0001>
module attributes {stable_mosaic.version = 11 : i64} {
  func.func @_distill_kl_blocksum_kernel(%arg0: i32, %arg1: memref<8x32xf32, #tpu.memory_space<vmem>>, %arg2: memref<8x32xf32, #tpu.memory_space<vmem>>, %arg3: memref<1x8x128xf32, #tpu.memory_space<vmem>>) attributes {dimension_semantics = [#tpu.dimension_semantics<parallel>], iteration_bounds = array<i64: 1>, scalar_prefetch = 0 : i64, scratch_operands = 0 : i64, tpu.core_type = #tpu.core_type<tc>, window_params = [{transform_indices = @transform_0, window_bounds = array<i64: 8, 32>}, {transform_indices = @transform_1, window_bounds = array<i64: 8, 32>}, {transform_indices = @transform_2, window_bounds = array<i64: 1, 8, 128>}]} {
    %c0 = arith.constant 0 : index
    %c0_0 = arith.constant 0 : index
    %0 = vector.load %arg1[%c0, %c0_0] : memref<8x32xf32, #tpu.memory_space<vmem>>, vector<8x32xf32>
    %c0_1 = arith.constant 0 : index
    %c0_2 = arith.constant 0 : index
    %1 = vector.load %arg2[%c0_1, %c0_2] : memref<8x32xf32, #tpu.memory_space<vmem>>, vector<8x32xf32>
    %cst = arith.constant 2.500000e-01 : f32
    %2 = vector.broadcast %cst : f32 to vector<8x32xf32>
    %3 = arith.mulf %0, %2 : vector<8x32xf32>
    %cst_3 = arith.constant 2.500000e-01 : f32
    %4 = vector.broadcast %cst_3 : f32 to vector<8x32xf32>
    %5 = arith.mulf %1, %4 : vector<8x32xf32>
    %cst_4 = arith.constant dense<0xFF800000> : vector<8xf32>
    %6 = vector.multi_reduction <maximumf>, %3, %cst_4 [1] : vector<8x32xf32> to vector<8xf32>
    %7 = vector.shape_cast %6 : vector<8xf32> to vector<8x1xf32>
    %8 = vector.broadcast %7 : vector<8x1xf32> to vector<8x32xf32>
    %9 = arith.subf %3, %8 : vector<8x32xf32>
    %10 = math.exp %9 : vector<8x32xf32>
    %cst_5 = arith.constant dense<0.000000e+00> : vector<8xf32>
    %11 = vector.multi_reduction <add>, %10, %cst_5 [1] : vector<8x32xf32> to vector<8xf32>
    %12 = vector.shape_cast %11 : vector<8xf32> to vector<8x1xf32>
    %13 = math.log %12 : vector<8x1xf32>
    %cst_6 = arith.constant dense<0xFF800000> : vector<8xf32>
    %14 = vector.multi_reduction <maximumf>, %5, %cst_6 [1] : vector<8x32xf32> to vector<8xf32>
    %15 = vector.shape_cast %14 : vector<8xf32> to vector<8x1xf32>
    %16 = vector.broadcast %15 : vector<8x1xf32> to vector<8x32xf32>
    %17 = arith.subf %5, %16 : vector<8x32xf32>
    %18 = math.exp %17 : vector<8x32xf32>
    %cst_7 = arith.constant dense<0.000000e+00> : vector<8xf32>
    %19 = vector.multi_reduction <add>, %18, %cst_7 [1] : vector<8x32xf32> to vector<8xf32>
    %20 = vector.shape_cast %19 : vector<8xf32> to vector<8x1xf32>
    %21 = arith.subf %5, %3 : vector<8x32xf32>
    %22 = arith.mulf %18, %21 : vector<8x32xf32>
    %cst_8 = arith.constant dense<0.000000e+00> : vector<8xf32>
    %23 = vector.multi_reduction <add>, %22, %cst_8 [1] : vector<8x32xf32> to vector<8xf32>
    %24 = vector.shape_cast %23 : vector<8xf32> to vector<8x1xf32>
    %25 = tpu.reciprocal %20 : vector<8x1xf32> -> vector<8x1xf32>
    %26 = arith.mulf %25, %24 : vector<8x1xf32>
    %27 = arith.addf %7, %13 : vector<8x1xf32>
    %28 = arith.addf %26, %27 : vector<8x1xf32>
    %29 = math.log %20 : vector<8x1xf32>
    %30 = arith.addf %15, %29 : vector<8x1xf32>
    %31 = arith.subf %28, %30 : vector<8x1xf32>
    %c8_i32 = arith.constant 8 : i32
    %32 = arith.muli %arg0, %c8_i32 : i32
    %33 = tpu.iota {dimensions = array<i32: 0>} : vector<8x1xi32>
    %34 = vector.broadcast %32 : i32 to vector<8x1xi32>
    %35 = arith.addi %34, %33 : vector<8x1xi32>
    %c8_i32_9 = arith.constant 8 : i32
    %36 = vector.broadcast %c8_i32_9 : i32 to vector<8x1xi32>
    %37 = arith.cmpi slt, %35, %36 : vector<8x1xi32>
    %cst_10 = arith.constant 0.000000e+00 : f32
    %38 = vector.broadcast %cst_10 : f32 to vector<8x1xf32>
    %39 = arith.select %37, %31, %38 : vector<8x1xi1>, vector<8x1xf32>
    %40 = vector.shape_cast %39 : vector<8x1xf32> to vector<1x8x1xf32>
    %cst_11 = arith.constant dense<0.000000e+00> : vector<1xf32>
    %41 = vector.multi_reduction <add>, %40, %cst_11 [1, 2] : vector<1x8x1xf32> to vector<1xf32>
    %42 = vector.shape_cast %41 : vector<1xf32> to vector<1x1x1xf32>
    %43 = vector.extract %42[0, 0, 0] : f32 from vector<1x1x1xf32>
    %44 = vector.broadcast %43 : f32 to vector<1x8x128xf32>
    %c0_12 = arith.constant 0 : index
    %c0_13 = arith.constant 0 : index
    %c0_14 = arith.constant 0 : index
    %45 = vector.load %arg3[%c0_12, %c0_13, %c0_14] : memref<1x8x128xf32, #tpu.memory_space<vmem>>, vector<1x8x128xf32>
    tpu.vector_store %arg3[%c0_12, %c0_13, %c0_14], %44 {strides = array<i32>} : memref<1x8x128xf32, #tpu.memory_space<vmem>>, vector<1x8x128xf32>,
    return
  }
  func.func @transform_0(%arg0: i32) -> (i32, i32) {
    %c0_i32 = arith.constant 0 : i32
    %c0_i32_0 = arith.constant 0 : i32
    return %arg0, %c0_i32 : i32, i32
  }
  func.func @transform_1(%arg0: i32) -> (i32, i32) {
    %c0_i32 = arith.constant 0 : i32
    %c0_i32_0 = arith.constant 0 : i32
    return %arg0, %c0_i32 : i32, i32
  }
  func.func @transform_2(%arg0: i32) -> (i32, i32, i32) {
    %c0_i32 = arith.constant 0 : i32
    %c0_i32_0 = arith.constant 0 : i32
    %c0_i32_1 = arith.constant 0 : i32
    return %arg0, %c0_i32, %c0_i32_0 : i32, i32, i32
  }
}

</mosaic_0001>

<bundles_post_ra>
// kernel: tpu_custom_call.1
= control target key start
LH: loop header
LB: loop body
LE: loop exit
PB: predicated region body
PF: predicated region fallthrough
CT: control target
= control target key end

     0   :  { %7 = vsyncpa [#allocation3], 0  ;;  %s256_s0 = inlined_call_operand.hbm [shape: f32[8,32], index: 0, kind: input, shape index: {}]   ;;  %s257_s1 = inlined_call_operand.hbm [shape: f32[8,32], index: 1, kind: input, shape index: {}]   ;;  %s258_s2 = inlined_call_operand.hbm [shape: f32[1,8,128], index: 2, kind: output, shape index: {}]  }
   0x1   :  { %8 = vsyncpa [#allocation6], 0 }
   0x2   :  { %9 = vsyncpa [#allocation4], 0  ;;  %s197_s9 = smov [#allocation2]   ;;  %s198_s11 = smov [#allocation5]  }
   0x3   :  { %s16_s10 = sshll.u32 %s197_s9, 4  ;;  %s26_s12 = sshll.u32 %s198_s11, 4  ;;  %s17_s10 = int_to_ptr.vmem [resolvable:$true] %s16_s10  ;;  %s27_s12 = int_to_ptr.vmem [resolvable:$true] %s26_s12 }
   0x4   :  { %s125_s15 = scalar_lea.hbm %s256_s0, 128 }
   0x5   :  { %p126_p0 = scmp.ne.s32.totalorder %s256_s0, %s125_s15  ;;  %p129_p1 = scmp.lt.u32.totalorder %s125_s15, %s256_s0 }
   0x7   :  { %p131_p2 = pnand %p129_p1, %p126_p0 }
   0x9   :  { %134 = shalt.err (!%p131_p2)
}
   0xa   :  { %s135_s20 = scalar_lea.vmem %s17_s10, 128  ;;  %p140_p4 = scmp.lt.s32.totalorder %s17_s10, %s17_s10 }
   0xb   :  { %p136_p3 = scmp.ne.s32.totalorder %s17_s10, %s135_s20  ;;  %p141_p5 = scmp.lt.s32.totalorder %s135_s20, %s135_s20 }
   0xd   :  { %p142_p6 = por %p141_p5, %p140_p4 }
   0xf   :  { %p143_p7 = pnand %p142_p6, %p136_p3 }
  0x11   :  { %146 = shalt.err (!%p143_p7)
}
  0x12   :  { %19 = dma.hbm_to_vmem [thread:$0]  %s256_s0, 128, %s17_s10, [#allocation3]  }
  0x13   :  { %s147_s25 = scalar_lea.hbm %s257_s1, 128 }
  0x14   :  { %p148_p8 = scmp.ne.s32.totalorder %s257_s1, %s147_s25  ;;  %p151_p9 = scmp.lt.u32.totalorder %s147_s25, %s257_s1 }
  0x16   :  { %p153_p10 = pnand %p151_p9, %p148_p8 }
  0x18   :  { %156 = shalt.err (!%p153_p10)
}
  0x19   :  { %s157_s30 = scalar_lea.vmem %s27_s12, 128  ;;  %p162_p12 = scmp.lt.s32.totalorder %s27_s12, %s27_s12 }
  0x1a   :  { %p158_p11 = scmp.ne.s32.totalorder %s27_s12, %s157_s30  ;;  %p163_p13 = scmp.lt.s32.totalorder %s157_s30, %s157_s30 }
  0x1c   :  { %p164_p0 = por %p163_p13, %p162_p12 }
  0x1e   :  { %p165_p1 = pnand %p164_p0, %p158_p11 }
  0x20   :  { %168 = shalt.err (!%p165_p1)
}
  0x21   :  { %29 = dma.hbm_to_vmem [thread:$0]  %s257_s1, 128, %s27_s12, [#allocation6]  }
  0x22   :  { %191 = dma.done.wait [#allocation3], 128  }
  0x23   :  { %192 = vsyncadd [#allocation3], 4294967168 }
  0x24   :  { %193 = dma.done.wait [#allocation6], 128  }
  0x25   :  { %194 = vsyncadd [#allocation6], 4294967168  ;;  %v36_v0 = vld [vmem:[#allocation2] sm:$0xff]  ;;  %vm40_vm0 = vcmask 261120   ;;  %v37_v1 = vld [vmem:[#allocation5] sm:$0xff]  ;;  %vm81_vm1 = vcmask 7168  }
  0x26   :  { %v38_v2 = vmul.f32 0.25, %v36_v0  ;;  %v39_v3 = vmul.f32 0.25, %v37_v1  ;;  %s199_s1 = smov [#allocation7]  }
  0x27   :  { %s100_s4 = sshll.u32 %s199_s1, 4  ;;  %s101_s4 = int_to_ptr.vmem [resolvable:$true] %s100_s4 }
  0x28   :  { %v41_v4 = vsel %vm40_vm0, %v38_v2, -inf  ;;  %v52_v5 = vsel %vm40_vm0, %v39_v3, -inf  ;;  %v61_v14 = vsub.f32 %v39_v3, %v38_v2  ;;  %s169_s6 = scalar_lea.vmem %s101_s4, 128  ;;  %p174_p3 = scmp.lt.s32.totalorder %s101_s4, %s101_s4 }
  0x29   :  { %42 = vmax.xlane.f32.xlu0 %v41_v4  ;;  %p170_p2 = scmp.ne.s32.totalorder %s101_s4, %s169_s6  ;;  %p175_p4 = scmp.lt.s32.totalorder %s169_s6, %s169_s6 }
  0x2b   :  { %p176_p5 = por %p175_p4, %p174_p3 }
  0x2d   :  { %53 = vmax.xlane.f32.xlu0 %v52_v5  ;;  %p177_p6 = pnand %p176_p5, %p170_p2 }
  0xb6   :  { %v43_v6 = vpop.xlane.xlu0 %42 }
  0xb7   :  { %v44_v7 = vsub.f32 %v38_v2, %v43_v6 }
  0xb9   :  { %v45_v8 = vmul.f32 1.442695, %v44_v7 }
  0xba   :  { %v54_v9 = vpop.xlane.xlu0 %53 }
  0xbb   :  { %115 = vpow2.f32 %v45_v8  ;;  %v55_v10 = vsub.f32 %v39_v3, %v54_v9 }
  0xbd   :  { %v56_v11 = vmul.f32 1.442695, %v55_v10 }
  0xbf   :  { %117 = vpow2.f32 %v56_v11 }
  0xc5   :  { %v116_v12 = vpop.eup %115 }
  0xc6   :  { %v47_v13 = vsel %vm40_vm0, %v116_v12, 0.0 }
  0xc7   :  { %48 = vadd.xlane.f32.xlu1 %v47_v13 }
  0xc9   :  { %v118_v15 = vpop.eup %117 }
  0xca   :  { %v58_v16 = vsel %vm40_vm0, %v118_v15, 0.0  ;;  %v62_v17 = vmul.f32 %v118_v15, %v61_v14 }
  0xcb   :  { %59 = vadd.xlane.f32.xlu1 %v58_v16 }
  0xcc   :  { %v63_v18 = vsel %vm40_vm0, %v62_v17, 0.0 }
  0xcd   :  { %64 = vadd.xlane.f32.xlu0 %v63_v18 }
 0x154   :  { %v49_v19 = vpop.xlane.xlu1 %48 }
 0x155   :  { %119 = vlog2.f32 %v49_v19 }
 0x158   :  { %v60_v20 = vpop.xlane.xlu1 %59 }
 0x159   :  { %121 = vrcp.f32 %v60_v20 }
 0x15a   :  { %123 = vlog2.f32 %v60_v20  ;;  %v65_v24 = vpop.xlane.xlu0 %64 }
 0x15f   :  { %v120_v21 = vpop.eup %119 }
 0x160   :  { %v51_v22 = vmul.f32 0.6931472, %v120_v21 }
 0x162   :  { %v68_v26 = vadd.f32 %v51_v22, %v43_v6 }
 0x163   :  { %v122_v23 = vpop.eup %121 }
 0x164   :  { %v124_v25 = vpop.eup %123  ;;  %v67_v27 = vmul.f32 %v122_v23, %v65_v24 }
 0x165   :  { %v71_v28 = vmul.f32 0.6931472, %v124_v25 }
 0x166   :  { %v69_v29 = vadd.f32 %v68_v26, %v67_v27 }
 0x167   :  { %v72_v30 = vadd.f32 %v71_v28, %v54_v9 }
 0x169   :  { %v73_v31 = vsub.f32 %v69_v29, %v72_v30 }
 0x16b   :  { %v82_v32 = vsel %vm81_vm1, %v73_v31, 0.0 }
 0x16c   :  { %83 = vadd.xlane.f32.xlu1 %v82_v32 }
 0x1f9   :  { %v84_v33 = vpop.xlane.xlu1 %83 }
 0x1fa   :  { %v85_v34 = vrot.slane %v84_v33, 4 }
 0x1fc   :  { %v86_v35 = vadd.f32 %v85_v34, %v84_v33 }
 0x1fe   :  { %v87_v36 = vrot.slane %v86_v35, 2 }
 0x200   :  { %v88_v37 = vadd.f32 %v87_v36, %v86_v35 }
 0x202   :  { %v89_v38 = vrot.slane %v88_v37, 1 }
 0x204   :  { %v90_v39 = vadd.f32 %v89_v38, %v88_v37 }
 0x206   :  { %110 = vpush %v90_v39 }
 0x237   :  { %s111_s5 = spop %110 }
 0x238   :  { %v92_v40 = vstv %s111_s5 }
 0x239   :  { %93 = vst [vmem:[#allocation7] sm:$0xff] %v92_v40 }
 0x23a   :  { %180 = shalt.err (!%p177_p6)
}
 0x23b   :  { %s181_s9 = scalar_lea.hbm %s258_s2, 128 }
 0x23c   :  { %p182_p7 = scmp.ne.s32.totalorder %s258_s2, %s181_s9  ;;  %p185_p8 = scmp.lt.u32.totalorder %s181_s9, %s258_s2 }
 0x23e   :  { %p187_p9 = pnand %p185_p8, %p182_p7 }
 0x240   :  { %190 = shalt.err (!%p187_p9)
}
 0x241   :  { %103 = dma.vmem_to_hbm [thread:$0]  %s101_s4, 128, %s258_s2, [#allocation4]  }
 0x242   :  { %195 = dma.done.wait [#allocation4], 128  }
 0x243   :  { %196 = vsyncadd [#allocation4], 4294967168 }
 0x244   :  { %107 = vsyncpa [#allocation3], 1 }
 0x245   :  { %108 = vsyncpa [#allocation6], 1 }
 0x246   :  { %109 = vsyncpa [#allocation4], 1 }

</bundles_post_ra>
